<compile_context>
chip_gen: v7x
topology: tpu7x:2x2x1
jax: 0.10.0
libtpu: 0.0.40
codegen_flags: <defaults>
</compile_context>

<pallas_src>
import functools

import jax
import jax.numpy as jnp
from jax import lax
from jax.experimental import pallas as pl


# ------------------------------ fused kernel ---------------------------------
# TODO(synk): the `resnet` backbone referenced by PrototypeGraph is not provided
# in the source; a minimal conv3x3 -> ReLU -> global-avg-pool feature extractor
# plus a linear distillation head is used as a deterministic stand-in.
# TODO(synk): Linear4D's definition is not provided; it is modeled as a
# per-graph, per-node linear map (weight (G, N, F) + bias) feeding the Sigmoid.
def _fused_kernel(patch_ref, pool_ref, wconv_ref, whead_ref, wnt_ref, bn_ref,
                  dT_ref, m0T_ref, out_ref, *,
                  num_nodes, num_leaves, num_graphs, num_jumps, lane):
    N, L, G = num_nodes, num_leaves, num_graphs
    NL = N + L
    B = pool_ref.shape[0]

    # --- representation stand-in: conv-as-matmul -> ReLU -> GAP -> head ------
    y = jnp.dot(patch_ref[...], wconv_ref[...],
                preferred_element_type=jnp.float32)            # (B*H*W, Cout)
    y = jnp.maximum(y, 0.0)                                    # ReLU
    # global average pool as an MXU matmul with a block-diagonal pooling matrix
    feats = jnp.dot(pool_ref[...], y,
                    preferred_element_type=jnp.float32)        # (B, Cout)
    distill = jnp.dot(feats, whead_ref[...],
                      preferred_element_type=jnp.float32)      # (B, L)

    # --- nodes = Sigmoid(Linear4D(feats)) for all graphs at once -------------
    logits = jnp.dot(feats, wnt_ref[...],
                     preferred_element_type=jnp.float32) + bn_ref[...]  # (B, G*N)
    # exact reciprocal (approx=True would risk the 1e-5 check at no real gain here)
    bvals = pl.reciprocal(1.0 + jnp.exp(-logits), approx=False)

    col = lax.broadcasted_iota(jnp.int32, (B, NL), 1)
    init_prob = jnp.where(col == 0, 1.0, 0.0).astype(jnp.float32)  # roots=None

    eps = 1e-5
    pieces = []
    for g in range(G):                              # G is tiny & static -> unrolled
        bg = bvals[:, g * N:(g + 1) * N]            # (B, N)
        dT = dT_ref[g]                              # (N, NL) = (M1 - M0)^T (precomputed)
        m0T = m0T_ref[g]                            # (N, NL) = M0^T       (precomputed)
        prob = init_prob
        for _ in range(num_jumps):
            pn = prob[:, :N]
            walk = (jnp.dot(bg * pn, dT, preferred_element_type=jnp.float32) +
                    jnp.dot(pn, m0T, preferred_element_type=jnp.float32))   # (B, NL)
            tail = jnp.where(col >= N, prob, 0.0)   # identity block on the leaves
            prob = walk + tail
        leaves = prob[:, N:]                        # (B, L)
        leaves = jnp.where(leaves > 0.0, leaves, eps)        # interval() clamp
        leaves = jnp.where(leaves < 1.0, leaves, 1.0 - eps)
        pieces.append(leaves)

    pieces.append(distill)
    used = (G + 1) * L
    if lane > used:
        pieces.append(jnp.zeros((B, lane - used), jnp.float32))
    out_ref[...] = jnp.concatenate(pieces, axis=-1)  # one lane-dense (B, lane) store


# ------------------------------ JAX wrapper -----------------------------------
@functools.partial(jax.jit, static_argnums=(2,))
def prototype_graph_forward(x_nchw, params, num_jumps):
    wconv, whead = params["wconv"], params["whead"]
    wn, bn, ml, mr = params["wn"], params["bn"], params["ml"], params["mr"]

    B, Cin, H, W = x_nchw.shape
    Cout = wconv.shape[-1]
    L = whead.shape[-1]
    G, N, F = wn.shape
    NL = ml.shape[1]
    assert NL == N + L

    # im2col in JAX glue (tiny at these shapes).
    # TODO(synk): for a real ResNet backbone (large H*W*Cin) form the 3x3 taps
    # inside the kernel from a tiled input instead of materializing 9x patches.
    x = jnp.transpose(x_nchw, (0, 2, 3, 1))                    # NCHW -> NHWC
    xpad = jnp.pad(x, ((0, 0), (1, 1), (1, 1), (0, 0)))        # 3x3 conv, pad=1
    taps = [xpad[:, dy:dy + H, dx:dx + W, :] for dy in range(3) for dx in range(3)]
    patches = jnp.stack(taps, axis=3).reshape(B * H * W, 9 * Cin)
    wmat = wconv.reshape(9 * Cin, Cout)

    # block-diagonal pooling matrix -> global-avg-pool becomes an MXU matmul
    pool = jnp.kron(jnp.eye(B, dtype=jnp.float32),
                    jnp.full((1, H * W), 1.0 / (H * W), jnp.float32))  # (B, B*H*W)

    # Parameter-only work hoisted out of the kernel (softmax over dim=1 of
    # M_left / M_right, difference, transposed layouts, flattened node linear).
    M0 = jax.nn.softmax(ml, axis=1)                            # (G, NL, N)
    M1 = jax.nn.softmax(mr, axis=1)
    dT = jnp.transpose(M1 - M0, (0, 2, 1))                     # (G, N, NL)
    m0T = jnp.transpose(M0, (0, 2, 1))                         # (G, N, NL)
    wnt = jnp.transpose(wn.reshape(G * N, F))                  # (F, G*N)
    bnf = bn.reshape(1, G * N)

    used = (G + 1) * L
    lane = ((used + 127) // 128) * 128                         # lane-dense slab width

    kern = functools.partial(_fused_kernel, num_nodes=N, num_leaves=L,
                             num_graphs=G, num_jumps=num_jumps, lane=lane)
    out = pl.pallas_call(
        kern,
        out_shape=jax.ShapeDtypeStruct((B, lane), jnp.float32),
    )(patches, pool, wmat, whead, wnt, bnf, dT, m0T)

    # unpack slab: [leaves(g=0) | ... | leaves(g=G-1) | distill | pad]
    ret = jnp.transpose(out[:, :G * L].reshape(B, G, L), (0, 2, 1))   # (B, L, G)
    distill = out[:, G * L:(G + 1) * L]                               # (B, L)
    loss_nodes = 0.0                                                  # eval mode
    return (ret, loss_nodes), distill


# ------------------------------ pure-JAX reference ----------------------------
def reference_forward(x_nchw, params, num_jumps):
    B, Cin, H, W = x_nchw.shape
    wconv, whead = params["wconv"], params["whead"]
    wn, bn, ml, mr = params["wn"], params["bn"], params["ml"], params["mr"]
    Cout = wconv.shape[-1]

    x = jnp.transpose(x_nchw, (0, 2, 3, 1))
    xpad = jnp.pad(x, ((0, 0), (1, 1), (1, 1), (0, 0)))
    taps = [xpad[:, dy:dy + H, dx:dx + W, :] for dy in range(3) for dx in range(3)]
    patches = jnp.stack(taps, axis=3).reshape(B, H * W, 9 * Cin)
    y = jnp.maximum(patches @ wconv.reshape(9 * Cin, Cout), 0.0)
    feats = y.mean(axis=1)
    head = feats @ whead

    G, N, _ = wn.shape
    NL = ml.shape[1]
    L = NL - N
    b = jax.nn.sigmoid(jnp.einsum('bf,gnf->gbn', feats, wn) + bn)          # (G,B,N)
    M0 = jax.nn.softmax(ml, axis=1)
    M1 = jax.nn.softmax(mr, axis=1)
    p = b[:, :, None, :] * (M1 - M0)[:, None] + M0[:, None]                # (G,B,NL,N)
    qc = jnp.zeros((NL, L)).at[jnp.arange(N, NL), jnp.arange(L)].set(1.0)
    Q = jnp.concatenate([p, jnp.broadcast_to(qc, (G, B, NL, L))], axis=-1)
    prob = jnp.zeros((G, B, NL)).at[..., 0].set(1.0)
    for _ in range(num_jumps):
        prob = jnp.einsum('gbnm,gbm->gbn', Q, prob)
    ret = jnp.transpose(prob[..., N:], (1, 2, 0))
    eps = 1e-5
    ret = jnp.where(ret > 0.0, ret, eps)
    ret = jnp.where(ret < 1.0, ret, 1.0 - eps)
    return ret, head


# ---------------------------------- main ---------------------------------------
if __name__ == "__main__":
    B, Cin, H, W = 2, 4, 16, 16
    in_features = 32          # size_of_feature of the representation stand-in
    num_nodes, num_leaves, num_jumps, num_graphs = 8, 8, 4, 2
    NL = num_nodes + num_leaves

    key = jax.random.PRNGKey(0)
    kx, kc, kh, kwn, kbn, kml, kmr = jax.random.split(key, 7)

    x = jax.random.normal(kx, (B, Cin, H, W), dtype=jnp.float32)   # NCHW input

    params = {
        "wconv": 0.1 * jax.random.normal(kc, (3, 3, Cin, in_features), jnp.float32),
        "whead": 0.1 * jax.random.normal(kh, (in_features, num_leaves), jnp.float32),
        "wn": 0.2 * jax.random.normal(kwn, (num_graphs, num_nodes, in_features), jnp.float32),
        "bn": 0.1 * jax.random.normal(kbn, (num_graphs, 1, num_nodes), jnp.float32),
        # nn.init.uniform_ on M_left / M_right
        "ml": jax.random.uniform(kml, (num_graphs, NL, num_nodes), jnp.float32),
        "mr": jax.random.uniform(kmr, (num_graphs, NL, num_nodes), jnp.float32),
    }

    (leaves, loss_nodes), distill = prototype_graph_forward(x, params, num_jumps)
    leaves = jax.block_until_ready(leaves)
    distill = jax.block_until_ready(distill)

    ref_leaves, ref_distill = reference_forward(x, params, num_jumps)
    assert leaves.shape == (B, num_leaves, num_graphs)
    assert distill.shape == (B, num_leaves)
    assert jnp.allclose(leaves, ref_leaves, atol=1e-5, rtol=1e-5)
    assert jnp.allclose(distill, ref_distill, atol=1e-5, rtol=1e-5)

    print("KERNEL_OK")
</pallas_src>

<mosaic_0001>
module attributes {stable_mosaic.version = 11 : i64} {
  func.func @_fused_kernel(%arg0: memref<512x36xf32, #tpu.memory_space<vmem>>, %arg1: memref<2x512xf32, #tpu.memory_space<vmem>>, %arg2: memref<36x32xf32, #tpu.memory_space<vmem>>, %arg3: memref<32x8xf32, #tpu.memory_space<vmem>>, %arg4: memref<32x16xf32, #tpu.memory_space<vmem>>, %arg5: memref<1x16xf32, #tpu.memory_space<vmem>>, %arg6: memref<2x8x16xf32, #tpu.memory_space<vmem>>, %arg7: memref<2x8x16xf32, #tpu.memory_space<vmem>>, %arg8: memref<2x128xf32, #tpu.memory_space<vmem>>) attributes {dimension_semantics = [], scalar_prefetch = 0 : i64, scratch_operands = 0 : i64, tpu.core_type = #tpu.core_type<tc>} {
    %c0 = arith.constant 0 : index
    %c0_0 = arith.constant 0 : index
    %0 = vector.load %arg0[%c0, %c0_0] : memref<512x36xf32, #tpu.memory_space<vmem>>, vector<512x36xf32>
    %c0_1 = arith.constant 0 : index
    %c0_2 = arith.constant 0 : index
    %1 = vector.load %arg2[%c0_1, %c0_2] : memref<36x32xf32, #tpu.memory_space<vmem>>, vector<36x32xf32>
    %cst = arith.constant dense<0.000000e+00> : vector<512x32xf32>
    %2 = tpu.matmul %0, %1, %cst {dimension_numbers = #tpu.dot_dimension_numbers<[1], [0], [0], [1], [0, 0, 1, 1], [], []>} : vector<512x36xf32>, vector<36x32xf32>, vector<512x32xf32> -> vector<512x32xf32>
    %cst_3 = arith.constant 0.000000e+00 : f32
    %3 = vector.broadcast %cst_3 : f32 to vector<512x32xf32>
    %4 = arith.maximumf %2, %3 : vector<512x32xf32>
    %c0_4 = arith.constant 0 : index
    %c0_5 = arith.constant 0 : index
    %5 = vector.load %arg1[%c0_4, %c0_5] : memref<2x512xf32, #tpu.memory_space<vmem>>, vector<2x512xf32>
    %cst_6 = arith.constant dense<0.000000e+00> : vector<2x32xf32>
    %6 = tpu.matmul %5, %4, %cst_6 {dimension_numbers = #tpu.dot_dimension_numbers<[1], [0], [0], [1], [0, 0, 1, 1], [], []>} : vector<2x512xf32>, vector<512x32xf32>, vector<2x32xf32> -> vector<2x32xf32>
    %c0_7 = arith.constant 0 : index
    %c0_8 = arith.constant 0 : index
    %7 = vector.load %arg3[%c0_7, %c0_8] : memref<32x8xf32, #tpu.memory_space<vmem>>, vector<32x8xf32>
    %cst_9 = arith.constant dense<0.000000e+00> : vector<2x8xf32>
    %8 = tpu.matmul %6, %7, %cst_9 {dimension_numbers = #tpu.dot_dimension_numbers<[1], [0], [0], [1], [0, 0, 1, 1], [], []>} : vector<2x32xf32>, vector<32x8xf32>, vector<2x8xf32> -> vector<2x8xf32>
    %c0_10 = arith.constant 0 : index
    %c0_11 = arith.constant 0 : index
    %9 = vector.load %arg4[%c0_10, %c0_11] : memref<32x16xf32, #tpu.memory_space<vmem>>, vector<32x16xf32>
    %cst_12 = arith.constant dense<0.000000e+00> : vector<2x16xf32>
    %10 = tpu.matmul %6, %9, %cst_12 {dimension_numbers = #tpu.dot_dimension_numbers<[1], [0], [0], [1], [0, 0, 1, 1], [], []>} : vector<2x32xf32>, vector<32x16xf32>, vector<2x16xf32> -> vector<2x16xf32>
    %c0_13 = arith.constant 0 : index
    %c0_14 = arith.constant 0 : index
    %11 = vector.load %arg5[%c0_13, %c0_14] : memref<1x16xf32, #tpu.memory_space<vmem>>, vector<1x16xf32>
    %12 = vector.broadcast %11 : vector<1x16xf32> to vector<2x16xf32>
    %13 = arith.addf %10, %12 : vector<2x16xf32>
    %cst_15 = arith.constant 0.000000e+00 : f32
    %14 = vector.broadcast %cst_15 : f32 to vector<2x16xf32>
    %15 = arith.subf %14, %13 : vector<2x16xf32>
    %16 = math.exp %15 : vector<2x16xf32>
    %cst_16 = arith.constant 1.000000e+00 : f32
    %17 = vector.broadcast %cst_16 : f32 to vector<2x16xf32>
    %18 = arith.addf %17, %16 : vector<2x16xf32>
    %19 = tpu.reciprocal %18 : vector<2x16xf32> -> vector<2x16xf32>
    %20 = tpu.iota {dimensions = array<i32: 1>} : vector<2x16xi32>
    %c0_i32 = arith.constant 0 : i32
    %21 = vector.broadcast %c0_i32 : i32 to vector<2x16xi32>
    %22 = arith.cmpi eq, %20, %21 : vector<2x16xi32>
    %cst_17 = arith.constant 1.000000e+00 : f32
    %cst_18 = arith.constant 0.000000e+00 : f32
    %23 = vector.broadcast %cst_17 : f32 to vector<2x16xf32>
    %24 = vector.broadcast %cst_18 : f32 to vector<2x16xf32>
    %25 = arith.select %22, %23, %24 : vector<2x16xi1>, vector<2x16xf32>
    %26 = vector.extract_strided_slice %19 {offsets = [0, 0], sizes = [2, 8], strides = [1, 1]} : vector<2x16xf32> to vector<2x8xf32>
    %c0_19 = arith.constant 0 : index
    %c0_20 = arith.constant 0 : index
    %c0_21 = arith.constant 0 : index
    %27 = vector.load %arg6[%c0_19, %c0_20, %c0_21] : memref<2x8x16xf32, #tpu.memory_space<vmem>>, vector<1x8x16xf32>
    %28 = vector.shape_cast %27 : vector<1x8x16xf32> to vector<8x16xf32>
    %c0_22 = arith.constant 0 : index
    %c0_23 = arith.constant 0 : index
    %c0_24 = arith.constant 0 : index
    %29 = vector.load %arg7[%c0_22, %c0_23, %c0_24] : memref<2x8x16xf32, #tpu.memory_space<vmem>>, vector<1x8x16xf32>
    %30 = vector.shape_cast %29 : vector<1x8x16xf32> to vector<8x16xf32>
    %31 = vector.extract_strided_slice %25 {offsets = [0, 0], sizes = [2, 8], strides = [1, 1]} : vector<2x16xf32> to vector<2x8xf32>
    %32 = arith.mulf %26, %31 : vector<2x8xf32>
    %cst_25 = arith.constant dense<0.000000e+00> : vector<2x16xf32>
    %33 = tpu.matmul %32, %28, %cst_25 {dimension_numbers = #tpu.dot_dimension_numbers<[1], [0], [0], [1], [0, 0, 1, 1], [], []>} : vector<2x8xf32>, vector<8x16xf32>, vector<2x16xf32> -> vector<2x16xf32>
    %cst_26 = arith.constant dense<0.000000e+00> : vector<2x16xf32>
    %34 = tpu.matmul %31, %30, %cst_26 {dimension_numbers = #tpu.dot_dimension_numbers<[1], [0], [0], [1], [0, 0, 1, 1], [], []>} : vector<2x8xf32>, vector<8x16xf32>, vector<2x16xf32> -> vector<2x16xf32>
    %35 = arith.addf %33, %34 : vector<2x16xf32>
    %c8_i32 = arith.constant 8 : i32
    %36 = vector.broadcast %c8_i32 : i32 to vector<2x16xi32>
    %37 = arith.cmpi sge, %20, %36 : vector<2x16xi32>
    %cst_27 = arith.constant 0.000000e+00 : f32
    %38 = vector.broadcast %cst_27 : f32 to vector<2x16xf32>
    %39 = arith.select %37, %25, %38 : vector<2x16xi1>, vector<2x16xf32>
    %40 = arith.addf %35, %39 : vector<2x16xf32>
    %41 = vector.extract_strided_slice %40 {offsets = [0, 0], sizes = [2, 8], strides = [1, 1]} : vector<2x16xf32> to vector<2x8xf32>
    %42 = arith.mulf %26, %41 : vector<2x8xf32>
    %cst_28 = arith.constant dense<0.000000e+00> : vector<2x16xf32>
    %43 = tpu.matmul %42, %28, %cst_28 {dimension_numbers = #tpu.dot_dimension_numbers<[1], [0], [0], [1], [0, 0, 1, 1], [], []>} : vector<2x8xf32>, vector<8x16xf32>, vector<2x16xf32> -> vector<2x16xf32>
    %cst_29 = arith.constant dense<0.000000e+00> : vector<2x16xf32>
    %44 = tpu.matmul %41, %30, %cst_29 {dimension_numbers = #tpu.dot_dimension_numbers<[1], [0], [0], [1], [0, 0, 1, 1], [], []>} : vector<2x8xf32>, vector<8x16xf32>, vector<2x16xf32> -> vector<2x16xf32>
    %45 = arith.addf %43, %44 : vector<2x16xf32>
    %c8_i32_30 = arith.constant 8 : i32
    %46 = vector.broadcast %c8_i32_30 : i32 to vector<2x16xi32>
    %47 = arith.cmpi sge, %20, %46 : vector<2x16xi32>
    %cst_31 = arith.constant 0.000000e+00 : f32
    %48 = vector.broadcast %cst_31 : f32 to vector<2x16xf32>
    %49 = arith.select %47, %40, %48 : vector<2x16xi1>, vector<2x16xf32>
    %50 = arith.addf %45, %49 : vector<2x16xf32>
    %51 = vector.extract_strided_slice %50 {offsets = [0, 0], sizes = [2, 8], strides = [1, 1]} : vector<2x16xf32> to vector<2x8xf32>
    %52 = arith.mulf %26, %51 : vector<2x8xf32>
    %cst_32 = arith.constant dense<0.000000e+00> : vector<2x16xf32>
    %53 = tpu.matmul %52, %28, %cst_32 {dimension_numbers = #tpu.dot_dimension_numbers<[1], [0], [0], [1], [0, 0, 1, 1], [], []>} : vector<2x8xf32>, vector<8x16xf32>, vector<2x16xf32> -> vector<2x16xf32>
    %cst_33 = arith.constant dense<0.000000e+00> : vector<2x16xf32>
    %54 = tpu.matmul %51, %30, %cst_33 {dimension_numbers = #tpu.dot_dimension_numbers<[1], [0], [0], [1], [0, 0, 1, 1], [], []>} : vector<2x8xf32>, vector<8x16xf32>, vector<2x16xf32> -> vector<2x16xf32>
    %55 = arith.addf %53, %54 : vector<2x16xf32>
    %c8_i32_34 = arith.constant 8 : i32
    %56 = vector.broadcast %c8_i32_34 : i32 to vector<2x16xi32>
    %57 = arith.cmpi sge, %20, %56 : vector<2x16xi32>
    %cst_35 = arith.constant 0.000000e+00 : f32
    %58 = vector.broadcast %cst_35 : f32 to vector<2x16xf32>
    %59 = arith.select %57, %50, %58 : vector<2x16xi1>, vector<2x16xf32>
    %60 = arith.addf %55, %59 : vector<2x16xf32>
    %61 = vector.extract_strided_slice %60 {offsets = [0, 0], sizes = [2, 8], strides = [1, 1]} : vector<2x16xf32> to vector<2x8xf32>
    %62 = arith.mulf %26, %61 : vector<2x8xf32>
    %cst_36 = arith.constant dense<0.000000e+00> : vector<2x16xf32>
    %63 = tpu.matmul %62, %28, %cst_36 {dimension_numbers = #tpu.dot_dimension_numbers<[1], [0], [0], [1], [0, 0, 1, 1], [], []>} : vector<2x8xf32>, vector<8x16xf32>, vector<2x16xf32> -> vector<2x16xf32>
    %cst_37 = arith.constant dense<0.000000e+00> : vector<2x16xf32>
    %64 = tpu.matmul %61, %30, %cst_37 {dimension_numbers = #tpu.dot_dimension_numbers<[1], [0], [0], [1], [0, 0, 1, 1], [], []>} : vector<2x8xf32>, vector<8x16xf32>, vector<2x16xf32> -> vector<2x16xf32>
    %65 = arith.addf %63, %64 : vector<2x16xf32>
    %c8_i32_38 = arith.constant 8 : i32
    %66 = vector.broadcast %c8_i32_38 : i32 to vector<2x16xi32>
    %67 = arith.cmpi sge, %20, %66 : vector<2x16xi32>
    %cst_39 = arith.constant 0.000000e+00 : f32
    %68 = vector.broadcast %cst_39 : f32 to vector<2x16xf32>
    %69 = arith.select %67, %60, %68 : vector<2x16xi1>, vector<2x16xf32>
    %70 = arith.addf %65, %69 : vector<2x16xf32>
    %71 = vector.extract_strided_slice %70 {offsets = [0, 8], sizes = [2, 8], strides = [1, 1]} : vector<2x16xf32> to vector<2x8xf32>
    %cst_40 = arith.constant 0.000000e+00 : f32
    %72 = vector.broadcast %cst_40 : f32 to vector<2x8xf32>
    %73 = arith.cmpf ogt, %71, %72 : vector<2x8xf32>
    %cst_41 = arith.constant 9.99999974E-6 : f32
    %74 = vector.broadcast %cst_41 : f32 to vector<2x8xf32>
    %75 = arith.select %73, %71, %74 : vector<2x8xi1>, vector<2x8xf32>
    %cst_42 = arith.constant 1.000000e+00 : f32
    %76 = vector.broadcast %cst_42 : f32 to vector<2x8xf32>
    %77 = arith.cmpf olt, %75, %76 : vector<2x8xf32>
    %cst_43 = arith.constant 0.999989986 : f32
    %78 = vector.broadcast %cst_43 : f32 to vector<2x8xf32>
    %79 = arith.select %77, %75, %78 : vector<2x8xi1>, vector<2x8xf32>
    %80 = vector.extract_strided_slice %19 {offsets = [0, 8], sizes = [2, 8], strides = [1, 1]} : vector<2x16xf32> to vector<2x8xf32>
    %c1 = arith.constant 1 : index
    %c0_44 = arith.constant 0 : index
    %c0_45 = arith.constant 0 : index
    %81 = vector.load %arg6[%c1, %c0_44, %c0_45] : memref<2x8x16xf32, #tpu.memory_space<vmem>>, vector<1x8x16xf32>
    %82 = vector.shape_cast %81 : vector<1x8x16xf32> to vector<8x16xf32>
    %c1_46 = arith.constant 1 : index
    %c0_47 = arith.constant 0 : index
    %c0_48 = arith.constant 0 : index
    %83 = vector.load %arg7[%c1_46, %c0_47, %c0_48] : memref<2x8x16xf32, #tpu.memory_space<vmem>>, vector<1x8x16xf32>
    %84 = vector.shape_cast %83 : vector<1x8x16xf32> to vector<8x16xf32>
    %85 = vector.extract_strided_slice %25 {offsets = [0, 0], sizes = [2, 8], strides = [1, 1]} : vector<2x16xf32> to vector<2x8xf32>
    %86 = arith.mulf %80, %85 : vector<2x8xf32>
    %cst_49 = arith.constant dense<0.000000e+00> : vector<2x16xf32>
    %87 = tpu.matmul %86, %82, %cst_49 {dimension_numbers = #tpu.dot_dimension_numbers<[1], [0], [0], [1], [0, 0, 1, 1], [], []>} : vector<2x8xf32>, vector<8x16xf32>, vector<2x16xf32> -> vector<2x16xf32>
    %cst_50 = arith.constant dense<0.000000e+00> : vector<2x16xf32>
    %88 = tpu.matmul %85, %84, %cst_50 {dimension_numbers = #tpu.dot_dimension_numbers<[1], [0], [0], [1], [0, 0, 1, 1], [], []>} : vector<2x8xf32>, vector<8x16xf32>, vector<2x16xf32> -> vector<2x16xf32>
    %89 = arith.addf %87, %88 : vector<2x16xf32>
    %c8_i32_51 = arith.constant 8 : i32
    %90 = vector.broadcast %c8_i32_51 : i32 to vector<2x16xi32>
    %91 = arith.cmpi sge, %20, %90 : vector<2x16xi32>
    %cst_52 = arith.constant 0.000000e+00 : f32
    %92 = vector.broadcast %cst_52 : f32 to vector<2x16xf32>
    %93 = arith.select %91, %25, %92 : vector<2x16xi1>, vector<2x16xf32>
    %94 = arith.addf %89, %93 : vector<2x16xf32>
    %95 = vector.extract_strided_slice %94 {offsets = [0, 0], sizes = [2, 8], strides = [1, 1]} : vector<2x16xf32> to vector<2x8xf32>
    %96 = arith.mulf %80, %95 : vector<2x8xf32>
    %cst_53 = arith.constant dense<0.000000e+00> : vector<2x16xf32>
    %97 = tpu.matmul %96, %82, %cst_53 {dimension_numbers = #tpu.dot_dimension_numbers<[1], [0], [0], [1], [0, 0, 1, 1], [], []>} : vector<2x8xf32>, vector<8x16xf32>, vector<2x16xf32> -> vector<2x16xf32>
    %cst_54 = arith.constant dense<0.000000e+00> : vector<2x16xf32>
    %98 = tpu.matmul %95, %84, %cst_54 {dimension_numbers = #tpu.dot_dimension_numbers<[1], [0], [0], [1], [0, 0, 1, 1], [], []>} : vector<2x8xf32>, vector<8x16xf32>, vector<2x16xf32> -> vector<2x16xf32>
    %99 = arith.addf %97, %98 : vector<2x16xf32>
    %c8_i32_55 = arith.constant 8 : i32
    %100 = vector.broadcast %c8_i32_55 : i32 to vector<2x16xi32>
    %101 = arith.cmpi sge, %20, %100 : vector<2x16xi32>
    %cst_56 = arith.constant 0.000000e+00 : f32
    %102 = vector.broadcast %cst_56 : f32 to vector<2x16xf32>
    %103 = arith.select %101, %94, %102 : vector<2x16xi1>, vector<2x16xf32>
    %104 = arith.addf %99, %103 : vector<2x16xf32>
    %105 = vector.extract_strided_slice %104 {offsets = [0, 0], sizes = [2, 8], strides = [1, 1]} : vector<2x16xf32> to vector<2x8xf32>
    %106 = arith.mulf %80, %105 : vector<2x8xf32>
    %cst_57 = arith.constant dense<0.000000e+00> : vector<2x16xf32>
    %107 = tpu.matmul %106, %82, %cst_57 {dimension_numbers = #tpu.dot_dimension_numbers<[1], [0], [0], [1], [0, 0, 1, 1], [], []>} : vector<2x8xf32>, vector<8x16xf32>, vector<2x16xf32> -> vector<2x16xf32>
    %cst_58 = arith.constant dense<0.000000e+00> : vector<2x16xf32>
    %108 = tpu.matmul %105, %84, %cst_58 {dimension_numbers = #tpu.dot_dimension_numbers<[1], [0], [0], [1], [0, 0, 1, 1], [], []>} : vector<2x8xf32>, vector<8x16xf32>, vector<2x16xf32> -> vector<2x16xf32>
    %109 = arith.addf %107, %108 : vector<2x16xf32>
    %c8_i32_59 = arith.constant 8 : i32
    %110 = vector.broadcast %c8_i32_59 : i32 to vector<2x16xi32>
    %111 = arith.cmpi sge, %20, %110 : vector<2x16xi32>
    %cst_60 = arith.constant 0.000000e+00 : f32
    %112 = vector.broadcast %cst_60 : f32 to vector<2x16xf32>
    %113 = arith.select %111, %104, %112 : vector<2x16xi1>, vector<2x16xf32>
    %114 = arith.addf %109, %113 : vector<2x16xf32>
    %115 = vector.extract_strided_slice %114 {offsets = [0, 0], sizes = [2, 8], strides = [1, 1]} : vector<2x16xf32> to vector<2x8xf32>
    %116 = arith.mulf %80, %115 : vector<2x8xf32>
    %cst_61 = arith.constant dense<0.000000e+00> : vector<2x16xf32>
    %117 = tpu.matmul %116, %82, %cst_61 {dimension_numbers = #tpu.dot_dimension_numbers<[1], [0], [0], [1], [0, 0, 1, 1], [], []>} : vector<2x8xf32>, vector<8x16xf32>, vector<2x16xf32> -> vector<2x16xf32>
    %cst_62 = arith.constant dense<0.000000e+00> : vector<2x16xf32>
    %118 = tpu.matmul %115, %84, %cst_62 {dimension_numbers = #tpu.dot_dimension_numbers<[1], [0], [0], [1], [0, 0, 1, 1], [], []>} : vector<2x8xf32>, vector<8x16xf32>, vector<2x16xf32> -> vector<2x16xf32>
    %119 = arith.addf %117, %118 : vector<2x16xf32>
    %c8_i32_63 = arith.constant 8 : i32
    %120 = vector.broadcast %c8_i32_63 : i32 to vector<2x16xi32>
    %121 = arith.cmpi sge, %20, %120 : vector<2x16xi32>
    %cst_64 = arith.constant 0.000000e+00 : f32
    %122 = vector.broadcast %cst_64 : f32 to vector<2x16xf32>
    %123 = arith.select %121, %114, %122 : vector<2x16xi1>, vector<2x16xf32>
    %124 = arith.addf %119, %123 : vector<2x16xf32>
    %125 = vector.extract_strided_slice %124 {offsets = [0, 8], sizes = [2, 8], strides = [1, 1]} : vector<2x16xf32> to vector<2x8xf32>
    %cst_65 = arith.constant 0.000000e+00 : f32
    %126 = vector.broadcast %cst_65 : f32 to vector<2x8xf32>
    %127 = arith.cmpf ogt, %125, %126 : vector<2x8xf32>
    %cst_66 = arith.constant 9.99999974E-6 : f32
    %128 = vector.broadcast %cst_66 : f32 to vector<2x8xf32>
    %129 = arith.select %127, %125, %128 : vector<2x8xi1>, vector<2x8xf32>
    %cst_67 = arith.constant 1.000000e+00 : f32
    %130 = vector.broadcast %cst_67 : f32 to vector<2x8xf32>
    %131 = arith.cmpf olt, %129, %130 : vector<2x8xf32>
    %cst_68 = arith.constant 0.999989986 : f32
    %132 = vector.broadcast %cst_68 : f32 to vector<2x8xf32>
    %133 = arith.select %131, %129, %132 : vector<2x8xi1>, vector<2x8xf32>
    %cst_69 = arith.constant 0.000000e+00 : f32
    %134 = vector.broadcast %cst_69 : f32 to vector<2x104xf32>
    %135 = tpu.concatenate %79, %133, %8, %134 in 1 : vector<2x8xf32>, vector<2x8xf32>, vector<2x8xf32>, vector<2x104xf32> -> vector<2x128xf32>
    %c0_70 = arith.constant 0 : index
    %c0_71 = arith.constant 0 : index
    %136 = vector.load %arg8[%c0_70, %c0_71] : memref<2x128xf32, #tpu.memory_space<vmem>>, vector<2x128xf32>
    tpu.vector_store %arg8[%c0_70, %c0_71], %135 {strides = array<i32>} : memref<2x128xf32, #tpu.memory_space<vmem>>, vector<2x128xf32>,
    return
  }
}

</mosaic_0001>

<bundles_post_ra>
// kernel: prototype_graph_forward.1
= control target key start
LH: loop header
LB: loop body
LE: loop exit
PB: predicated region body
PF: predicated region fallthrough
CT: control target
= control target key end

     0   :  { %vm98_vm0 = vcmask 293888   ;;  %vm291_vm1 = vcmask 1043456   ;;  %vm2890_vm2 = vmmov 0   ;;  %vm911_vm4 = vcmask 261120   ;;  %s2893_s25 = smov 120   ;;  %s3395_s2 = inlined_call_operand.vmem [shape: f32[36,32], index: 2, kind: input, shape index: {}]   ;;  %s3396_s0 = inlined_call_operand.vmem [shape: f32[512,36], index: 0, kind: input, shape index: {}]   ;;  %s3397_s1 = inlined_call_operand.vmem [shape: f32[2,512], index: 1, kind: input, shape index: {}]   ;;  %s3398_s3 = inlined_call_operand.vmem [shape: f32[32,8], index: 3, kind: input, shape index: {}]   ;;  %s3399_s4 = inlined_call_operand.vmem [shape: f32[32,16], index: 4, kind: input, shape index: {}]   ;;  %s3400_s7 = inlined_call_operand.vmem [shape: f32[2,8,16], index: 7, kind: input, shape index: {}]   ;;  %s3401_s6 = inlined_call_operand.vmem [shape: f32[2,8,16], index: 6, kind: input, shape index: {}]   ;;  %s3402_s5 = inlined_call_operand.vmem [shape: f32[1,16], index: 5, kind: input, shape index: {}]   ;;  %s3403_s8 = inlined_call_operand.vmem [shape: f32[2,128], index: 8, kind: output, shape index: {}]  }
   0x1   :  { %v93_v0 = vld [vmem:[%s3395_s2] sm:$0xff]  ;;  %v94_v1 = vld [vmem:[%s3395_s2 + $0x8] sm:$0xff]  ;;  %v95_v2 = vld [vmem:[%s3395_s2 + $0x10] sm:$0xff]  ;;  %vm1078_vm5 = vcmask 64512   ;;  %vm2308_vm11 = vcmask 130048   ;;  %vm2310_vm12 = vcmask 195584  }
   0x2   :  { %v2792_v3 = vpack.c.bf16 %v94_v1, %v93_v0  ;;  %v96_v4 = vld [vmem:[%s3395_s2 + $0x18] sm:$0xff]  ;;  %v29_v5 = vld [vmem:[%s3396_s0] sm:$0xff]  ;;  %v30_v8 = vld [vmem:[%s3396_s0 + $0x8] sm:$0xff] }
   0x3   :  { %v2796_v6 = vpack.c.bf16 %v96_v4, %v95_v2  ;;  %2594 = vmatprep.mubr.msk.f32.mxu0 %vm98_vm0, %v29_v5  ;;  %v97_v7 = vld [vmem:[%s3395_s2 + $0x20] sm:$0xf]  ;;  %v31_v9 = vld [vmem:[%s3396_s0 + $0x10] sm:$0xff]  ;;  %v32_v10 = vld [vmem:[%s3396_s0 + $0x18] sm:$0xff] }
   0x4   :  { %2793 = vmatprep.subr.bf16.mxu0 %v2792_v3  ;;  %v33_v11 = vld [vmem:[%s3396_s0 + $0x20] sm:$0xff]  ;;  %v34_v12 = vld [vmem:[%s3396_s0 + $0x28] sm:$0xff]  ;;  %v35_v13 = vld [vmem:[%s3396_s0 + $0x30] sm:$0xff] }
   0x5   :  { %2795 = vmatpush3.bf16.msra.mxu0 %v2792_v3  ;;  %v36_v14 = vld [vmem:[%s3396_s0 + $0x38] sm:$0xff]  ;;  %v37_v15 = vld [vmem:[%s3396_s0 + $0x40] sm:$0xff]  ;;  %v38_v16 = vld [vmem:[%s3396_s0 + $0x48] sm:$0xff] }
   0x6   :  { %2797 = vmatprep.subr.bf16.mxu0 %v2796_v6  ;;  %v39_v17 = vld [vmem:[%s3396_s0 + $0x50] sm:$0xff]  ;;  %v40_v18 = vld [vmem:[%s3396_s0 + $0x58] sm:$0xff]  ;;  %v41_v19 = vld [vmem:[%s3396_s0 + $0x60] sm:$0xff] }
   0x7   :  { %v42_v20 = vld [vmem:[%s3396_s0 + $0x68] sm:$0xff]  ;;  %v43_v21 = vld [vmem:[%s3396_s0 + $0x70] sm:$0xff]  ;;  %v44_v22 = vld [vmem:[%s3396_s0 + $0x78] sm:$0xff] }
   0x8   :  { %v45_v23 = vld [vmem:[%s3396_s0 + $0x80] sm:$0xff]  ;;  %v46_v24 = vld [vmem:[%s3396_s0 + $0x88] sm:$0xff]  ;;  %v47_v25 = vld [vmem:[%s3396_s0 + $0x90] sm:$0xff] }
   0x9   :  { %2799 = vmatpush3.bf16.msra.mxu0 %v2796_v6  ;;  %v48_v26 = vld [vmem:[%s3396_s0 + $0x98] sm:$0xff]  ;;  %v49_v27 = vld [vmem:[%s3396_s0 + $0xa0] sm:$0xff]  ;;  %v50_v28 = vld [vmem:[%s3396_s0 + $0xa8] sm:$0xff] }
   0xa   :  { %2592 = vmatprep.subr.msk.mxu0 %vm291_vm1, %v97_v7  ;;  %v51_v29 = vld [vmem:[%s3396_s0 + $0xb0] sm:$0xff]  ;;  %v52_v30 = vld [vmem:[%s3396_s0 + $0xb8] sm:$0xff]  ;;  %v53_v31 = vld [vmem:[%s3396_s0 + $0xc0] sm:$0xff] }
   0xb   :  { %v54_v32 = vld [vmem:[%s3396_s0 + $0xc8] sm:$0xff]  ;;  %v55_v33 = vld [vmem:[%s3396_s0 + $0xd0] sm:$0xff]  ;;  %v56_v34 = vld [vmem:[%s3396_s0 + $0xd8] sm:$0xff] }
   0xc   :  { %v57_v35 = vld [vmem:[%s3396_s0 + $0xe0] sm:$0xff]  ;;  %v58_v36 = vld [vmem:[%s3396_s0 + $0xe8] sm:$0xff]  ;;  %v59_v37 = vld [vmem:[%s3396_s0 + $0xf0] sm:$0xff] }
   0xd   :  { %2593 = vmatpush3.msk.msra.mxu0 %vm291_vm1, %v97_v7  ;;  %v60_v38 = vld [vmem:[%s3396_s0 + $0xf8] sm:$0xff]  ;;  %v61_v39 = vld [vmem:[%s3396_s0 + $0x100] sm:$0xff]  ;;  %v62_v40 = vld [vmem:[%s3396_s0 + $0x108] sm:$0xff]  ;;  %v2888_v7 = vmov 1983009808  }
   0xe   :  { %2595 = vmatmul.mubr.msk.f32.vlgmr.msra.gmra.mrb[0].mxu0 %vm98_vm0, %v30_v8  ;;  %v63_v41 = vld [vmem:[%s3396_s0 + $0x110] sm:$0xff]  ;;  %v64_v42 = vld [vmem:[%s3396_s0 + $0x118] sm:$0xff]  ;;  %v65_v43 = vld [vmem:[%s3396_s0 + $0x120] sm:$0xff]  ;;  %v748_v8 = vunpack.c.l.s4 %v2888_v7 }
   0xf   :  { %2597 = vmatprep.mubr.msk.f32.mxu0 %vm98_vm0, %v31_v9  ;;  %v66_v44 = vld [vmem:[%s3396_s0 + $0x128] sm:$0xff]  ;;  %v67_v45 = vld [vmem:[%s3396_s0 + $0x130] sm:$0xff]  ;;  %v68_v46 = vld [vmem:[%s3396_s0 + $0x138] sm:$0xff]  ;;  %v750_v9 = vlaneseq }
  0x10   :  { %v69_v47 = vld [vmem:[%s3396_s0 + $0x140] sm:$0xff]  ;;  %v70_v48 = vld [vmem:[%s3396_s0 + $0x148] sm:$0xff]  ;;  %v71_v49 = vld [vmem:[%s3396_s0 + $0x150] sm:$0xff] }
  0x11   :  { %v72_v50 = vld [vmem:[%s3396_s0 + $0x158] sm:$0xff]  ;;  %v73_v51 = vld [vmem:[%s3396_s0 + $0x160] sm:$0xff]  ;;  %v74_v52 = vld [vmem:[%s3396_s0 + $0x168] sm:$0xff] }
  0x12   :  { %2598 = vmatmul.mubr.msk.f32.gmra.mrb[2].mxu0 %vm98_vm0, %v32_v10  ;;  %v75_v53 = vld [vmem:[%s3396_s0 + $0x170] sm:$0xff]  ;;  %v76_v54 = vld [vmem:[%s3396_s0 + $0x178] sm:$0xff]  ;;  %v77_v55 = vld [vmem:[%s3396_s0 + $0x180] sm:$0xff]  ;;  %v749_v10 = vunpack.c.0.s8 %v748_v8 }
  0x13   :  { %2600 = vmatprep.mubr.msk.f32.mxu0 %vm98_vm0, %v33_v11  ;;  %v78_v56 = vld [vmem:[%s3396_s0 + $0x188] sm:$0xff]  ;;  %v79_v57 = vld [vmem:[%s3396_s0 + $0x190] sm:$0xff]  ;;  %v80_v58 = vld [vmem:[%s3396_s0 + $0x198] sm:$0xff]  ;;  %v751_v11 = vshrl.u32 %v750_v9, 7 }
  0x14   :  { %v81_v59 = vld [vmem:[%s3396_s0 + $0x1a0] sm:$0xff]  ;;  %v82_v60 = vld [vmem:[%s3396_s0 + $0x1a8] sm:$0xff]  ;;  %v83_v61 = vld [vmem:[%s3396_s0 + $0x1b0] sm:$0xff] }
  0x15   :  { %v84_v62 = vld [vmem:[%s3396_s0 + $0x1b8] sm:$0xff]  ;;  %v85_v63 = vld [vmem:[%s3396_s0 + $0x1c0] sm:$0xff]  ;;  %v86_v0 = vld [vmem:[%s3396_s0 + $0x1c8] sm:$0xff] }
  0x16   :  { %2601 = vmatmul.mubr.msk.f32.gmra.mrb[4].mxu0 %vm98_vm0, %v34_v12  ;;  %v87_v1 = vld [vmem:[%s3396_s0 + $0x1d0] sm:$0xff]  ;;  %v88_v2 = vld [vmem:[%s3396_s0 + $0x1d8] sm:$0xff]  ;;  %v89_v3 = vld [vmem:[%s3396_s0 + $0x1e0] sm:$0xff]  ;;  %v752_v12 = vsub.s32 %v749_v10, %v751_v11 }
  0x17   :  { %2603 = vmatprep.mubr.msk.f32.mxu0 %vm98_vm0, %v35_v13  ;;  %v90_v4 = vld [vmem:[%s3396_s0 + $0x1e8] sm:$0xff]  ;;  %v91_v5 = vld [vmem:[%s3396_s0 + $0x1f0] sm:$0xff]  ;;  %v92_v6 = vld [vmem:[%s3396_s0 + $0x1f8] sm:$0xff] }
  0x18   :  { %v744_v13 = vld [vmem:[%s3397_s1] sm:$0xff] }
  0x1a   :  { %2604 = vmatmul.mubr.msk.f32.gmra.mrb[6].mxu0 %vm98_vm0, %v36_v14  ;;  %v3215_v14 = vrot.slane %v744_v13, %v752_v12 }
  0x1b   :  { %2606 = vmatprep.mubr.msk.f32.mxu0 %vm98_vm0, %v37_v15 }
  0x1c   :  { %v761_v15 = vcombine.high %v3215_v14, %v3215_v14 }
  0x1e   :  { %2607 = vmatmul.mubr.msk.f32.gmra.mrb[8].mxu0 %vm98_vm0, %v38_v16  ;;  %831 = vmatprep.mubr.f32.mxu1 %v761_v15  ;;  %v746_v16 = vcombine.high %v744_v13, %v744_v13 }
  0x1f   :  { %2609 = vmatprep.mubr.msk.f32.mxu0 %vm98_vm0, %v39_v17 }
  0x22   :  { %2610 = vmatmul.mubr.msk.f32.gmra.mrb[10].mxu0 %vm98_vm0, %v40_v18 }
  0x23   :  { %2612 = vmatprep.mubr.msk.f32.mxu0 %vm98_vm0, %v41_v19 }
  0x26   :  { %2613 = vmatmul.mubr.msk.f32.gmra.mrb[12].mxu0 %vm98_vm0, %v42_v20  ;;  %v3219_v20 = vrot.slane %v746_v16, %v752_v12 }
  0x27   :  { %2615 = vmatprep.mubr.msk.f32.mxu0 %vm98_vm0, %v43_v21 }
  0x2a   :  { %2616 = vmatmul.mubr.msk.f32.gmra.mrb[14].mxu0 %vm98_vm0, %v44_v22 }
  0x2b   :  { %2618 = vmatprep.mubr.msk.f32.mxu0 %vm98_vm0, %v45_v23 }
  0x2e   :  { %2619 = vmatmul.mubr.msk.f32.gmra.mrb[16].mxu0 %vm98_vm0, %v46_v24 }
  0x2f   :  { %2621 = vmatprep.mubr.msk.f32.mxu0 %vm98_vm0, %v47_v25 }
  0x32   :  { %2622 = vmatmul.mubr.msk.f32.gmra.mrb[18].mxu0 %vm98_vm0, %v48_v26 }
  0x33   :  { %2624 = vmatprep.mubr.msk.f32.mxu0 %vm98_vm0, %v49_v27 }
  0x36   :  { %2625 = vmatmul.mubr.msk.f32.gmra.mrb[20].mxu0 %vm98_vm0, %v50_v28 }
  0x37   :  { %2627 = vmatprep.mubr.msk.f32.mxu0 %vm98_vm0, %v51_v29 }
  0x3a   :  { %2628 = vmatmul.mubr.msk.f32.gmra.mrb[22].mxu0 %vm98_vm0, %v52_v30 }
  0x3b   :  { %2630 = vmatprep.mubr.msk.f32.mxu0 %vm98_vm0, %v53_v31 }
  0x3e   :  { %2631 = vmatmul.mubr.msk.f32.gmra.mrb[24].mxu0 %vm98_vm0, %v54_v32 }
  0x3f   :  { %2633 = vmatprep.mubr.msk.f32.mxu0 %vm98_vm0, %v55_v33 }
  0x42   :  { %2634 = vmatmul.mubr.msk.f32.gmra.mrb[26].mxu0 %vm98_vm0, %v56_v34 }
  0x43   :  { %2636 = vmatprep.mubr.msk.f32.mxu0 %vm98_vm0, %v57_v35 }
  0x46   :  { %2637 = vmatmul.mubr.msk.f32.gmra.mrb[28].mxu0 %vm98_vm0, %v58_v36 }
  0x47   :  { %2639 = vmatprep.mubr.msk.f32.mxu0 %vm98_vm0, %v59_v37 }
  0x4a   :  { %2640 = vmatmul.mubr.msk.f32.gmra.mrb[30].mxu0 %vm98_vm0, %v60_v38 }
  0x4b   :  { %2642 = vmatprep.mubr.msk.f32.mxu0 %vm98_vm0, %v61_v39 }
  0x4e   :  { %2643 = vmatmul.mubr.msk.f32.gmra.mrb[32].mxu0 %vm98_vm0, %v62_v40 }
  0x4f   :  { %2645 = vmatprep.mubr.msk.f32.mxu0 %vm98_vm0, %v63_v41 }
  0x52   :  { %2646 = vmatmul.mubr.msk.f32.gmra.mrb[34].mxu0 %vm98_vm0, %v64_v42 }
  0x53   :  { %2648 = vmatprep.mubr.msk.f32.mxu0 %vm98_vm0, %v65_v43 }
  0x56   :  { %2649 = vmatmul.mubr.msk.f32.gmra.mrb[36].mxu0 %vm98_vm0, %v66_v44 }
  0x57   :  { %2651 = vmatprep.mubr.msk.f32.mxu0 %vm98_vm0, %v67_v45 }
  0x5a   :  { %2652 = vmatmul.mubr.msk.f32.gmra.mrb[38].mxu0 %vm98_vm0, %v68_v46 }
  0x5b   :  { %2654 = vmatprep.mubr.msk.f32.mxu0 %vm98_vm0, %v69_v47 }
  0x5e   :  { %2655 = vmatmul.mubr.msk.f32.gmra.mrb[40].mxu0 %vm98_vm0, %v70_v48 }
  0x5f   :  { %2657 = vmatprep.mubr.msk.f32.mxu0 %vm98_vm0, %v71_v49 }
  0x62   :  { %2658 = vmatmul.mubr.msk.f32.gmra.mrb[42].mxu0 %vm98_vm0, %v72_v50 }
  0x63   :  { %2660 = vmatprep.mubr.msk.f32.mxu0 %vm98_vm0, %v73_v51 }
  0x66   :  { %2661 = vmatmul.mubr.msk.f32.gmra.mrb[44].mxu0 %vm98_vm0, %v74_v52 }
  0x67   :  { %2663 = vmatprep.mubr.msk.f32.mxu0 %vm98_vm0, %v75_v53 }
  0x6a   :  { %2664 = vmatmul.mubr.msk.f32.gmra.mrb[46].mxu0 %vm98_vm0, %v76_v54 }
  0x6b   :  { %2666 = vmatprep.mubr.msk.f32.mxu0 %vm98_vm0, %v77_v55 }
  0x6e   :  { %2667 = vmatmul.mubr.msk.f32.gmra.mrb[48].mxu0 %vm98_vm0, %v78_v56 }
  0x6f   :  { %2669 = vmatprep.mubr.msk.f32.mxu0 %vm98_vm0, %v79_v57 }
  0x72   :  { %2670 = vmatmul.mubr.msk.f32.gmra.mrb[50].mxu0 %vm98_vm0, %v80_v58 }
  0x73   :  { %2672 = vmatprep.mubr.msk.f32.mxu0 %vm98_vm0, %v81_v59 }
  0x76   :  { %2673 = vmatmul.mubr.msk.f32.gmra.mrb[52].mxu0 %vm98_vm0, %v82_v60 }
  0x77   :  { %2675 = vmatprep.mubr.msk.f32.mxu0 %vm98_vm0, %v83_v61 }
  0x7a   :  { %2676 = vmatmul.mubr.msk.f32.gmra.mrb[54].mxu0 %vm98_vm0, %v84_v62 }
  0x7b   :  { %2678 = vmatprep.mubr.msk.f32.mxu0 %vm98_vm0, %v85_v63 }
  0x7e   :  { %2679 = vmatmul.mubr.msk.f32.gmra.mrb[56].mxu0 %vm98_vm0, %v86_v0 }
  0x7f   :  { %2681 = vmatprep.mubr.msk.f32.mxu0 %vm98_vm0, %v87_v1 }
  0x82   :  { %2682 = vmatmul.mubr.msk.f32.gmra.mrb[58].mxu0 %vm98_vm0, %v88_v2 }
  0x83   :  { %2684 = vmatprep.mubr.msk.f32.mxu0 %vm98_vm0, %v89_v3 }
  0x86   :  { %2685 = vmatmul.mubr.msk.f32.gmra.mrb[60].mxu0 %vm98_vm0, %v90_v4 }
  0x87   :  { %2687 = vmatprep.mubr.msk.f32.mxu0 %vm98_vm0, %v91_v5 }
  0x8a   :  { %2688 = vmatmul.mubr.msk.f32.gmra.mrb[62].mxu0 %vm98_vm0, %v92_v6 }
  0xe1   :  { %v2596_v17 = vpop.f32.mrb[0].mxu0 }
  0xe2   :  { %v681_v18 = vmax.f32 %v2596_v17, 0.0  ;;  %v361_v19 = vpop.f32.mrb[1].mxu0 }
  0xe3   :  { %v680_v21 = vmax.f32 %v361_v19, 0.0 }
  0xe5   :  { %v2599_v22 = vpop.f32.mrb[2].mxu0  ;;  %v2802_v23 = vpack.c.bf16 %v681_v18, %v680_v21 }
  0xe6   :  { %v683_v24 = vmax.f32 %v2599_v22, 0.0  ;;  %v371_v25 = vpop.f32.mrb[3].mxu0 }
  0xe7   :  { %v682_v26 = vmax.f32 %v371_v25, 0.0 }
  0xe9   :  { %v2806_v27 = vpack.c.bf16 %v683_v24, %v682_v26  ;;  %v2602_v28 = vpop.f32.mrb[4].mxu0 }
  0xea   :  { %v685_v29 = vmax.f32 %v2602_v28, 0.0  ;;  %v381_v30 = vpop.f32.mrb[5].mxu0 }
  0xeb   :  { %v684_v31 = vmax.f32 %v381_v30, 0.0 }
  0xed   :  { %v2810_v32 = vpack.c.bf16 %v685_v29, %v684_v31  ;;  %v2605_v33 = vpop.f32.mrb[6].mxu0 }
  0xee   :  { %v687_v34 = vmax.f32 %v2605_v33, 0.0  ;;  %v391_v35 = vpop.f32.mrb[7].mxu0 }
  0xef   :  { %v686_v36 = vmax.f32 %v391_v35, 0.0 }
  0xf1   :  { %v2814_v37 = vpack.c.bf16 %v687_v34, %v686_v36  ;;  %v2608_v38 = vpop.f32.mrb[8].mxu0 }
  0xf2   :  { %v689_v39 = vmax.f32 %v2608_v38, 0.0  ;;  %v401_v40 = vpop.f32.mrb[9].mxu0 }
  0xf3   :  { %v688_v41 = vmax.f32 %v401_v40, 0.0 }
  0xf5   :  { %v2818_v42 = vpack.c.bf16 %v689_v39, %v688_v41  ;;  %v2611_v43 = vpop.f32.mrb[10].mxu0  ;;  %v762_v41 = vcombine.high %v3219_v20, %v3219_v20 }
  0xf6   :  { %v691_v44 = vmax.f32 %v2611_v43, 0.0  ;;  %v411_v45 = vpop.f32.mrb[11].mxu0 }
  0xf7   :  { %v690_v46 = vmax.f32 %v411_v45, 0.0 }
  0xf9   :  { %v2822_v47 = vpack.c.bf16 %v691_v44, %v690_v46  ;;  %v2614_v48 = vpop.f32.mrb[12].mxu0 }
  0xfa   :  { %v693_v49 = vmax.f32 %v2614_v48, 0.0  ;;  %v421_v50 = vpop.f32.mrb[13].mxu0 }
  0xfb   :  { %v692_v51 = vmax.f32 %v421_v50, 0.0 }
  0xfd   :  { %v2826_v52 = vpack.c.bf16 %v693_v49, %v692_v51  ;;  %v2617_v53 = vpop.f32.mrb[14].mxu0 }
  0xfe   :  { %v695_v54 = vmax.f32 %v2617_v53, 0.0  ;;  %v431_v55 = vpop.f32.mrb[15].mxu0 }
  0xff   :  { %v694_v56 = vmax.f32 %v431_v55, 0.0 }
 0x101   :  { %v2830_v57 = vpack.c.bf16 %v695_v54, %v694_v56  ;;  %v2620_v58 = vpop.f32.mrb[16].mxu0 }
 0x102   :  { %v697_v59 = vmax.f32 %v2620_v58, 0.0  ;;  %v441_v60 = vpop.f32.mrb[17].mxu0 }
 0x103   :  { %v696_v61 = vmax.f32 %v441_v60, 0.0 }
 0x105   :  { %v2623_v62 = vpop.f32.mrb[18].mxu0  ;;  %v2800_v63 = vpack.c.bf16 %v697_v59, %v696_v61 }
 0x106   :  { %v699_v0 = vmax.f32 %v2623_v62, 0.0  ;;  %v451_v1 = vpop.f32.mrb[19].mxu0 }
 0x107   :  { %v698_v2 = vmax.f32 %v451_v1, 0.0  ;;  %2801 = vmatprep.subr.bf16.mxu1 %v2800_v63 }
 0x108   :  { %2803 = vmatpush3.bf16.msra.mxu1 %v2802_v23 }
 0x109   :  { %v2804_v3 = vpack.c.bf16 %v699_v0, %v698_v2  ;;  %v2626_v4 = vpop.f32.mrb[20].mxu0 }
 0x10a   :  { %v701_v5 = vmax.f32 %v2626_v4, 0.0  ;;  %v461_v6 = vpop.f32.mrb[21].mxu0 }
 0x10b   :  { %v700_v7 = vmax.f32 %v461_v6, 0.0  ;;  %2805 = vmatprep.subr.bf16.mxu1 %v2804_v3 }
 0x10c   :  { %2807 = vmatpush3.bf16.msra.mxu1 %v2806_v27 }
 0x10d   :  { %v2808_v8 = vpack.c.bf16 %v701_v5, %v700_v7  ;;  %v2629_v10 = vpop.f32.mrb[22].mxu0 }
 0x10e   :  { %v703_v11 = vmax.f32 %v2629_v10, 0.0  ;;  %v471_v12 = vpop.f32.mrb[23].mxu0 }
 0x10f   :  { %v702_v13 = vmax.f32 %v471_v12, 0.0  ;;  %2809 = vmatprep.subr.bf16.mxu1 %v2808_v8 }
 0x110   :  { %2811 = vmatpush3.bf16.msra.mxu1 %v2810_v32 }
 0x111   :  { %v2812_v15 = vpack.c.bf16 %v703_v11, %v702_v13  ;;  %v2632_v16 = vpop.f32.mrb[24].mxu0 }
 0x112   :  { %v705_v17 = vmax.f32 %v2632_v16, 0.0  ;;  %v481_v18 = vpop.f32.mrb[25].mxu0 }
 0x113   :  { %v704_v19 = vmax.f32 %v481_v18, 0.0  ;;  %2813 = vmatprep.subr.bf16.mxu1 %v2812_v15 }
 0x114   :  { %2815 = vmatpush3.bf16.msra.mxu1 %v2814_v37 }
 0x115   :  { %v2816_v21 = vpack.c.bf16 %v705_v17, %v704_v19  ;;  %v2635_v22 = vpop.f32.mrb[26].mxu0 }
 0x116   :  { %v707_v23 = vmax.f32 %v2635_v22, 0.0  ;;  %v491_v24 = vpop.f32.mrb[27].mxu0 }
 0x117   :  { %v706_v25 = vmax.f32 %v491_v24, 0.0  ;;  %2817 = vmatprep.subr.bf16.mxu1 %v2816_v21 }
 0x118   :  { %2819 = vmatpush3.bf16.msra.mxu1 %v2818_v42 }
 0x119   :  { %v2820_v26 = vpack.c.bf16 %v707_v23, %v706_v25  ;;  %v2638_v27 = vpop.f32.mrb[28].mxu0 }
 0x11a   :  { %v709_v28 = vmax.f32 %v2638_v27, 0.0  ;;  %v501_v29 = vpop.f32.mrb[29].mxu0 }
 0x11b   :  { %v708_v30 = vmax.f32 %v501_v29, 0.0  ;;  %2821 = vmatprep.subr.bf16.mxu1 %v2820_v26 }
 0x11c   :  { %2823 = vmatpush3.bf16.msra.mxu1 %v2822_v47 }
 0x11d   :  { %v2824_v31 = vpack.c.bf16 %v709_v28, %v708_v30  ;;  %v2641_v32 = vpop.f32.mrb[30].mxu0 }
 0x11e   :  { %v711_v33 = vmax.f32 %v2641_v32, 0.0  ;;  %v511_v34 = vpop.f32.mrb[31].mxu0 }
 0x11f   :  { %v710_v35 = vmax.f32 %v511_v34, 0.0  ;;  %2825 = vmatprep.subr.bf16.mxu1 %v2824_v31 }
 0x120   :  { %2827 = vmatpush3.bf16.msra.mxu1 %v2826_v52 }
 0x121   :  { %v2828_v36 = vpack.c.bf16 %v711_v33, %v710_v35  ;;  %v2644_v37 = vpop.f32.mrb[32].mxu0 }
 0x122   :  { %v713_v38 = vmax.f32 %v2644_v37, 0.0  ;;  %v521_v39 = vpop.f32.mrb[33].mxu0 }
 0x123   :  { %v712_v40 = vmax.f32 %v521_v39, 0.0  ;;  %2829 = vmatprep.subr.bf16.mxu1 %v2828_v36 }
 0x124   :  { %2831 = vmatpush3.bf16.msra.mxu1 %v2830_v57 }
 0x125   :  { %v2834_v42 = vpack.c.bf16 %v713_v38, %v712_v40  ;;  %v2647_v43 = vpop.f32.mrb[34].mxu0 }
 0x126   :  { %v715_v44 = vmax.f32 %v2647_v43, 0.0  ;;  %v531_v45 = vpop.f32.mrb[35].mxu0 }
 0x127   :  { %v714_v46 = vmax.f32 %v531_v45, 0.0  ;;  %832 = vmatmul.mubr.f32.vlgmr.msra.gmra.mrb[0].mxu1 %v3215_v14 }
 0x128   :  { %901 = vmatprep.mubr.f32.mxu1 %v762_v41 }
 0x129   :  { %v2838_v47 = vpack.c.bf16 %v715_v44, %v714_v46  ;;  %v2650_v48 = vpop.f32.mrb[36].mxu0 }
 0x12a   :  { %v717_v49 = vmax.f32 %v2650_v48, 0.0  ;;  %v541_v50 = vpop.f32.mrb[37].mxu0 }
 0x12b   :  { %v716_v51 = vmax.f32 %v541_v50, 0.0 }
 0x12d   :  { %v2842_v52 = vpack.c.bf16 %v717_v49, %v716_v51  ;;  %v2653_v53 = vpop.f32.mrb[38].mxu0 }
 0x12e   :  { %v719_v54 = vmax.f32 %v2653_v53, 0.0  ;;  %v551_v55 = vpop.f32.mrb[39].mxu0 }
 0x12f   :  { %v718_v56 = vmax.f32 %v551_v55, 0.0 }
 0x131   :  { %v2846_v57 = vpack.c.bf16 %v719_v54, %v718_v56  ;;  %v2656_v58 = vpop.f32.mrb[40].mxu0  ;;  %v2889_v56 = vmov 0.0|0.0  }
 0x132   :  { %v721_v59 = vmax.f32 %v2656_v58, 0.0  ;;  %v561_v60 = vpop.f32.mrb[41].mxu0  ;;  %v908_v58 = vld [vmem:[%s3398_s3 + $0x8] sm:$0xff] }
 0x133   :  { %v720_v61 = vmax.f32 %v561_v60, 0.0  ;;  %v909_v60 = vld [vmem:[%s3398_s3 + $0x10] sm:$0xff] }
 0x135   :  { %v2850_v62 = vpack.c.bf16 %v721_v59, %v720_v61  ;;  %v2659_v63 = vpop.f32.mrb[42].mxu0 }
 0x136   :  { %v723_v0 = vmax.f32 %v2659_v63, 0.0  ;;  %v571_v14 = vpop.f32.mrb[43].mxu0  ;;  %v3243_v63 = vand.u32 127, %v750_v9  ;;  %v986_v9 = vld [vmem:[%s3399_s4 + $0x8] sm:$0xff] }
 0x137   :  { %v722_v1 = vmax.f32 %v571_v14, 0.0 }
 0x138   :  { %vm1073_vm3 = vcmp.eq.s32.totalorder %v3243_v63, 0  ;;  %vm1225_vm6 = vcmp.ge.s32.totalorder %v3243_v63, 8 }
 0x139   :  { %v2854_v2 = vpack.c.bf16 %v723_v0, %v722_v1  ;;  %v2662_v3 = vpop.f32.mrb[44].mxu0 }
 0x13a   :  { %v725_v4 = vmax.f32 %v2662_v3, 0.0  ;;  %v581_v5 = vpop.f32.mrb[45].mxu0 }
 0x13b   :  { %v724_v6 = vmax.f32 %v581_v5, 0.0 }
 0x13d   :  { %v2858_v7 = vpack.c.bf16 %v725_v4, %v724_v6  ;;  %v2665_v8 = vpop.f32.mrb[46].mxu0  ;;  %v985_v4 = vld [vmem:[%s3399_s4] sm:$0xff] }
 0x13e   :  { %v727_v10 = vmax.f32 %v2665_v8, 0.0  ;;  %v591_v11 = vpop.f32.mrb[47].mxu0 }
 0x13f   :  { %v726_v12 = vmax.f32 %v591_v11, 0.0  ;;  %v988_v11 = vld [vmem:[%s3399_s4 + $0x18] sm:$0xff] }
 0x141   :  { %v2862_v13 = vpack.c.bf16 %v727_v10, %v726_v12  ;;  %v2668_v15 = vpop.f32.mrb[48].mxu0  ;;  %v987_v10 = vld [vmem:[%s3399_s4 + $0x10] sm:$0xff] }
 0x142   :  { %v729_v16 = vmax.f32 %v2668_v15, 0.0  ;;  %v601_v17 = vpop.f32.mrb[49].mxu0  ;;  %v2874_v12 = vpack.c.bf16 %v988_v11, %v987_v10  ;;  %v3274_v15 = vld [vmem:[%s3401_s6] sm:$0xff] }
 0x143   :  { %v728_v18 = vmax.f32 %v601_v17, 0.0 }
 0x145   :  { %v2832_v19 = vpack.c.bf16 %v729_v16, %v728_v18  ;;  %v2671_v21 = vpop.f32.mrb[50].mxu0  ;;  %v2383_v18 = vld [vmem:[%s3402_s5] ss:$0 sm:$0xff] }
 0x146   :  { %v731_v22 = vmax.f32 %v2671_v21, 0.0  ;;  %v611_v23 = vpop.f32.mrb[51].mxu0 }
 0x147   :  { %v730_v24 = vmax.f32 %v611_v23, 0.0  ;;  %2833 = vmatprep.subr.bf16.mxu1 %v2832_v19 }
 0x148   :  { %2835 = vmatpush3.bf16.msra.mxu1 %v2834_v42 }
 0x149   :  { %v2836_v25 = vpack.c.bf16 %v731_v22, %v730_v24  ;;  %v2674_v26 = vpop.f32.mrb[52].mxu0 }
 0x14a   :  { %v733_v27 = vmax.f32 %v2674_v26, 0.0  ;;  %v621_v28 = vpop.f32.mrb[53].mxu0 }
 0x14b   :  { %v732_v29 = vmax.f32 %v621_v28, 0.0  ;;  %2837 = vmatprep.subr.bf16.mxu1 %v2836_v25 }
 0x14c   :  { %2839 = vmatpush3.bf16.msra.mxu1 %v2838_v47 }
 0x14d   :  { %v2840_v30 = vpack.c.bf16 %v733_v27, %v732_v29  ;;  %v2677_v31 = vpop.f32.mrb[54].mxu0 }
 0x14e   :  { %v735_v32 = vmax.f32 %v2677_v31, 0.0  ;;  %v631_v33 = vpop.f32.mrb[55].mxu0 }
 0x14f   :  { %v734_v34 = vmax.f32 %v631_v33, 0.0  ;;  %2841 = vmatprep.subr.bf16.mxu1 %v2840_v30 }
 0x150   :  { %2843 = vmatpush3.bf16.msra.mxu1 %v2842_v52 }
 0x151   :  { %v2844_v35 = vpack.c.bf16 %v735_v32, %v734_v34  ;;  %v2680_v36 = vpop.f32.mrb[56].mxu0 }
 0x152   :  { %v737_v37 = vmax.f32 %v2680_v36, 0.0  ;;  %v641_v38 = vpop.f32.mrb[57].mxu0 }
 0x153   :  { %v736_v39 = vmax.f32 %v641_v38, 0.0  ;;  %2845 = vmatprep.subr.bf16.mxu1 %v2844_v35 }
 0x154   :  { %2847 = vmatpush3.bf16.msra.mxu1 %v2846_v57  ;;  %v907_v57 = vld [vmem:[%s3398_s3] sm:$0xff] }
 0x155   :  { %v2848_v40 = vpack.c.bf16 %v737_v37, %v736_v39  ;;  %v2683_v41 = vpop.f32.mrb[58].mxu0  ;;  %v2865_v59 = vpack.c.bf16 %v908_v58, %v907_v57 }
 0x156   :  { %v739_v42 = vmax.f32 %v2683_v41, 0.0  ;;  %v651_v43 = vpop.f32.mrb[59].mxu0 }
 0x157   :  { %v738_v44 = vmax.f32 %v651_v43, 0.0  ;;  %2849 = vmatprep.subr.bf16.mxu1 %v2848_v40 }
 0x158   :  { %2851 = vmatpush3.bf16.msra.mxu1 %v2850_v62  ;;  %v2891_v62 = vmov 0.0  }
 0x159   :  { %v2852_v45 = vpack.c.bf16 %v739_v42, %v738_v44  ;;  %v2686_v46 = vpop.f32.mrb[60].mxu0  ;;  %2782 = vmatprep.subr.mxu0 %v2891_v62  ;;  %2784 = vmatprep.mubr.msk.f32.mxu0 %vm2890_vm2, %v2891_v62  ;;  %v3247_v0 = vsel %vm1073_vm3, 1.0, %v2891_v62 }
 0x15a   :  { %v741_v47 = vmax.f32 %v2686_v46, 0.0  ;;  %v661_v48 = vpop.f32.mrb[61].mxu0  ;;  %v3302_v34 = vsel %vm1225_vm6, %v3247_v0, 0.0 }
 0x15b   :  { %v740_v49 = vmax.f32 %v661_v48, 0.0  ;;  %2853 = vmatprep.subr.bf16.mxu1 %v2852_v45 }
 0x15c   :  { %2855 = vmatpush3.bf16.msra.mxu1 %v2854_v2 }
 0x15d   :  { %v2856_v50 = vpack.c.bf16 %v741_v47, %v740_v49  ;;  %v2689_v51 = vpop.f32.mrb[62].mxu0  ;;  %v2394_v47 = vld [vmem:[%s3400_s7 + $0x8] sm:$0xff] }
 0x15e   :  { %v743_v52 = vmax.f32 %v2689_v51, 0.0  ;;  %v671_v53 = vpop.f32.mrb[63].mxu0  ;;  %2783 = vmatpush3.msra.mxu0 %v2394_v47 }
 0x15f   :  { %v742_v54 = vmax.f32 %v671_v53, 0.0  ;;  %2857 = vmatprep.subr.bf16.mxu1 %v2856_v50 }
 0x160   :  { %2859 = vmatpush3.bf16.msra.mxu1 %v2858_v7  ;;  %v2871_v7 = vpack.c.bf16 %v986_v9, %v985_v4 }
 0x161   :  { %v2860_v55 = vpack.c.bf16 %v743_v52, %v742_v54 }
 0x163   :  { %2861 = vmatprep.subr.bf16.mxu1 %v2860_v55 }
 0x164   :  { %2863 = vmatpush3.bf16.msra.mxu1 %v2862_v13  ;;  %v1076_v13 = vld [vmem:[%s3400_s7] sm:$0xff] }
 0x165   :  { %2864 = vmatprep.subr.bf16.mxu1 %v2889_v56 }
 0x167   :  { %902 = vmatmul.mubr.f32.vlgmr.msra.gmra.mrb[2].mxu1 %v3219_v20  ;;  %v910_v20 = vld [vmem:[%s3398_s3 + $0x18] sm:$0xff]  ;;  %s2892_s3 = smov 8  }
 0x168   :  { %2866 = vmatpush3.bf16.msra.mxu1 %v2865_v59  ;;  %v2868_v61 = vpack.c.bf16 %v910_v20, %v909_v60  ;;  %2698 = vmatprep.mubr.msk.f32.mxu1 %vm2890_vm2, %v2891_v62 }
 0x169   :  { %2867 = vmatprep.subr.bf16.mxu1 %v2889_v56  ;;  %1683 = vrot.lane.b32.xlu0 %v3247_v0, %s2892_s3 }
 0x16c   :  { %2869 = vmatpush3.bf16.msra.mxu1 %v2868_v61 }
 0x16d   :  { %2870 = vmatprep.subr.bf16.mxu1 %v2889_v56 }
 0x1db   :  { %v1684_v27 = vpop.permute.xlu0 %1683 }
 0x1fa   :  { %v2504_v14 = vpop.f32.mrb[0].mxu1 }
 0x1fb   :  { %v2505_v1 = vpop.f32.mrb[1].mxu1 }
 0x1fc   :  { %v2506_v2 = vadd.f32 %v2505_v1, %v2504_v14 }
 0x23a   :  { %v2539_v3 = vpop.f32.mrb[2].mxu1 }
 0x23b   :  { %v2540_v5 = vpop.f32.mrb[3].mxu1 }
 0x23c   :  { %v2541_v6 = vadd.f32 %v2540_v5, %v2539_v3 }
 0x23e   :  { %v904_v8 = vadd.f32 %v2541_v6, %v2506_v2 }
 0x240   :  { %2699 = vmatmul.mubr.msk.f32.vlgmr.msra.gmra.mrb[4].mxu1 %vm911_vm4, %v904_v8 }
 0x241   :  { %2872 = vmatpush3.bf16.msra.mxu1 %v2871_v7  ;;  %2709 = vmatprep.mubr.msk.f32.mxu1 %vm2890_vm2, %v2891_v62 }
 0x242   :  { %2873 = vmatprep.subr.bf16.mxu1 %v2889_v56  ;;  %v2393_v56 = vld [vmem:[%s3401_s6 + $0x8] sm:$0xff]  ;;  %s2894_s6 = smov 16  }
 0x245   :  { %2875 = vmatpush3.bf16.msra.mxu1 %v2874_v12 }
 0x246   :  { %2712 = vmatprep.subr.mxu1 %v2891_v62 }
 0x248   :  { %2710 = vmatmul.mubr.msk.f32.vlgmr.msra.gmra.mrb[6].mxu1 %vm911_vm4, %v904_v8 }
 0x249   :  { %2714 = vmatprep.mubr.msk.f32.mxu1 %vm2890_vm2, %v2891_v62  ;;  %2713 = vmatpush3.msra.mxu1 %v1076_v13 }
 0x24a   :  { %2717 = vmatprep.subr.mxu1 %v2891_v62 }
 0x24c   :  { %2715 = vmatmul.mubr.msk.f32.vlgmr.msra.gmra.mrb[8].mxu1 %vm1078_vm5, %v3247_v0 }
 0x24d   :  { %2718 = vmatpush3.msra.mxu1 %v3274_v15  ;;  %2719 = vmatprep.mubr.msk.f32.mxu1 %vm2890_vm2, %v2891_v62 }
 0x24e   :  { %2722 = vmatprep.subr.mxu1 %v2891_v62 }
 0x313   :  { %v3283_v16 = vpop.f32.mrb[4].mxu1 }
 0x314   :  { %v2700_v17 = vpop.f32.mrb[5].mxu1 }
 0x31b   :  { %v1062_v19 = vpop.f32.mrb[6].mxu1 }
 0x31c   :  { %v1063_v21 = vadd.f32 %v2383_v18, %v1062_v19  ;;  %v2711_v22 = vpop.f32.mrb[7].mxu1 }
 0x31e   :  { %v1066_v23 = vsub.f32 0.0, %v1063_v21 }
 0x31f   :  { %v1148_v31 = vpop.f32.mrb[8].mxu1 }
 0x320   :  { %v1067_v24 = vmul.f32 1.442695, %v1066_v23  ;;  %v2716_v32 = vpop.f32.mrb[9].mxu1 }
 0x322   :  { %2884 = vpow2.f32 %v1067_v24 }
 0x32c   :  { %v2885_v25 = vpop.eup %2884 }
 0x32d   :  { %v1069_v26 = vadd.f32 1.0, %v2885_v25 }
 0x32f   :  { %2886 = vrcp.f32 %v1069_v26 }
 0x339   :  { %v3288_v28 = vpop.eup %2886 }
 0x33a   :  { %v1686_v29 = vmul.f32 %v3288_v28, %v1684_v27  ;;  %v1077_v30 = vmul.f32 %v3288_v28, %v3247_v0 }
 0x33c   :  { %1758 = vrot.lane.b32.xlu0 %v1686_v29, %s2893_s25  ;;  %2720 = vmatmul.mubr.msk.f32.vlgmr.msra.gmra.mrb[10].mxu1 %vm1078_vm5, %v1077_v30 }
 0x33d   :  { %2723 = vmatpush3.msra.mxu1 %v1076_v13  ;;  %2724 = vmatprep.mubr.msk.f32.mxu1 %vm2890_vm2, %v2891_v62 }
 0x33e   :  { %2727 = vmatprep.subr.mxu1 %v2891_v62 }
 0x3ae   :  { %v1759_v57 = vpop.permute.xlu0 %1758 }
 0x40f   :  { %v1221_v33 = vpop.f32.mrb[10].mxu1 }
 0x410   :  { %v1222_v35 = vadd.f32 %v1221_v33, %v1148_v31  ;;  %v2721_v36 = vpop.f32.mrb[11].mxu1 }
 0x412   :  { %v1227_v37 = vadd.f32 %v3302_v34, %v1222_v35 }
 0x414   :  { %2725 = vmatmul.mubr.msk.f32.vlgmr.msra.gmra.mrb[12].mxu1 %vm1078_vm5, %v1227_v37  ;;  %v1228_v38 = vmul.f32 %v3288_v28, %v1227_v37  ;;  %v1375_v44 = vsel %vm1225_vm6, %v1227_v37, 0.0 }
 0x415   :  { %2728 = vmatpush3.msra.mxu1 %v3274_v15  ;;  %2729 = vmatprep.mubr.msk.f32.mxu1 %vm2890_vm2, %v2891_v62 }
 0x416   :  { %2732 = vmatprep.subr.mxu1 %v2891_v62 }
 0x418   :  { %2730 = vmatmul.mubr.msk.f32.vlgmr.msra.gmra.mrb[14].mxu1 %vm1078_vm5, %v1228_v38 }
 0x419   :  { %2733 = vmatpush3.msra.mxu1 %v1076_v13  ;;  %2734 = vmatprep.mubr.msk.f32.mxu1 %vm2890_vm2, %v2891_v62 }
 0x41a   :  { %2737 = vmatprep.subr.mxu1 %v2891_v62 }
 0x4e7   :  { %v1298_v39 = vpop.f32.mrb[12].mxu1 }
 0x4e8   :  { %v2726_v40 = vpop.f32.mrb[13].mxu1 }
 0x4eb   :  { %v1371_v41 = vpop.f32.mrb[14].mxu1 }
 0x4ec   :  { %v1372_v42 = vadd.f32 %v1371_v41, %v1298_v39  ;;  %v2731_v43 = vpop.f32.mrb[15].mxu1 }
 0x4ee   :  { %v1376_v45 = vadd.f32 %v1375_v44, %v1372_v42 }
 0x4f0   :  { %2735 = vmatmul.mubr.msk.f32.vlgmr.msra.gmra.mrb[16].mxu1 %vm1078_vm5, %v1376_v45  ;;  %v1377_v46 = vmul.f32 %v3288_v28, %v1376_v45  ;;  %v1524_v53 = vsel %vm1225_vm6, %v1376_v45, 0.0 }
 0x4f1   :  { %2738 = vmatpush3.msra.mxu1 %v3274_v15  ;;  %2739 = vmatprep.mubr.msk.f32.mxu1 %vm2890_vm2, %v2891_v62 }
 0x4f2   :  { %2742 = vmatprep.subr.mxu1 %v2891_v62 }
 0x4f4   :  { %2740 = vmatmul.mubr.msk.f32.vlgmr.msra.gmra.mrb[18].mxu1 %vm1078_vm5, %v1377_v46 }
 0x4f5   :  { %2743 = vmatpush3.msra.mxu1 %v1076_v13  ;;  %2744 = vmatprep.mubr.msk.f32.mxu1 %vm2890_vm2, %v2891_v62 }
 0x4f6   :  { %2747 = vmatprep.subr.mxu1 %v2891_v62 }
 0x5c3   :  { %v1447_v48 = vpop.f32.mrb[16].mxu1 }
 0x5c4   :  { %v2736_v49 = vpop.f32.mrb[17].mxu1 }
 0x5c7   :  { %v1520_v50 = vpop.f32.mrb[18].mxu1 }
 0x5c8   :  { %v1521_v51 = vadd.f32 %v1520_v50, %v1447_v48  ;;  %v2741_v52 = vpop.f32.mrb[19].mxu1 }
 0x5ca   :  { %v1525_v54 = vadd.f32 %v1524_v53, %v1521_v51 }
 0x5cc   :  { %2745 = vmatmul.mubr.msk.f32.vlgmr.msra.gmra.mrb[20].mxu1 %vm1078_vm5, %v1525_v54  ;;  %v1526_v55 = vmul.f32 %v3288_v28, %v1525_v54 }
 0x5cd   :  { %2748 = vmatpush3.msra.mxu1 %v3274_v15  ;;  %2749 = vmatprep.mubr.msk.f32.mxu1 %vm2890_vm2, %v2891_v62 }
 0x5ce   :  { %2752 = vmatprep.subr.mxu1 %v2891_v62 }
 0x5d0   :  { %2750 = vmatmul.mubr.msk.f32.vlgmr.msra.gmra.mrb[22].mxu1 %vm1078_vm5, %v1526_v55 }
 0x5d1   :  { %2753 = vmatpush3.msra.mxu1 %v2394_v47  ;;  %2754 = vmatprep.mubr.msk.f32.mxu1 %vm2890_vm2, %v2891_v62 }
 0x5d2   :  { %2757 = vmatprep.subr.mxu1 %v2891_v62 }
 0x5d4   :  { %2755 = vmatmul.mubr.msk.f32.vlgmr.msra.gmra.mrb[24].mxu1 %vm1078_vm5, %v3247_v0  ;;  %v1673_v0 = vsel %vm1225_vm6, %v1525_v54, 0.0 }
 0x5d5   :  { %2758 = vmatpush3.msra.mxu1 %v2393_v56  ;;  %2759 = vmatprep.mubr.msk.f32.mxu1 %vm2890_vm2, %v2891_v62 }
 0x5d6   :  { %2762 = vmatprep.subr.mxu1 %v2891_v62 }
 0x5d8   :  { %2760 = vmatmul.mubr.msk.f32.vlgmr.msra.gmra.mrb[26].mxu1 %vm1078_vm5, %v1759_v57 }
 0x5d9   :  { %2763 = vmatpush3.msra.mxu1 %v2394_v47  ;;  %2764 = vmatprep.mubr.msk.f32.mxu1 %vm2890_vm2, %v2891_v62 }
 0x5da   :  { %2767 = vmatprep.subr.mxu1 %v2891_v62 }
 0x69f   :  { %v1596_v58 = vpop.f32.mrb[20].mxu1 }
 0x6a0   :  { %v2746_v59 = vpop.f32.mrb[21].mxu1 }
 0x6a3   :  { %v1669_v60 = vpop.f32.mrb[22].mxu1 }
 0x6a4   :  { %v1670_v20 = vadd.f32 %v1669_v60, %v1596_v58  ;;  %v2751_v61 = vpop.f32.mrb[23].mxu1 }
 0x6a6   :  { %v1674_v14 = vadd.f32 %v1673_v0, %v1670_v20 }
 0x6a7   :  { %v1753_v1 = vpop.f32.mrb[24].mxu1 }
 0x6a8   :  { %v2756_v2 = vpop.f32.mrb[25].mxu1  ;;  %vm1675_vm7 = vcmp.gt.f32.partialorder %v1674_v14, 0.0 }
 0x6a9   :  { %v1676_v30 = vsel %vm1675_vm7, %v1674_v14, 1e-05 }
 0x6aa   :  { %vm1677_vm8 = vcmp.lt.f32.partialorder %v1676_v30, 1.0 }
 0x6ab   :  { %v1828_v3 = vpop.f32.mrb[26].mxu1  ;;  %v1678_v32 = vsel %vm1677_vm8, %v1676_v30, 0.99999 }
 0x6ac   :  { %v1829_v4 = vadd.f32 %v1828_v3, %v1753_v1  ;;  %v2761_v9 = vpop.f32.mrb[27].mxu1 }
 0x6ae   :  { %v1832_v5 = vadd.f32 %v1829_v4, %v3302_v34 }
 0x6b0   :  { %1834 = vrot.lane.b32.xlu1 %v1832_v5, %s2892_s3  ;;  %2765 = vmatmul.mubr.msk.f32.vlgmr.msra.gmra.mrb[28].mxu1 %vm1078_vm5, %v1832_v5  ;;  %v1985_v17 = vsel %vm1225_vm6, %v1832_v5, 0.0 }
 0x6b1   :  { %2768 = vmatpush3.msra.mxu1 %v2393_v56  ;;  %2769 = vmatprep.mubr.msk.f32.mxu1 %vm2890_vm2, %v2891_v62 }
 0x6b2   :  { %2772 = vmatprep.subr.mxu1 %v2891_v62 }
 0x722   :  { %v1835_v6 = vpop.permute.xlu1 %1834 }
 0x723   :  { %v1837_v7 = vmul.f32 %v3288_v28, %v1835_v6 }
 0x725   :  { %1911 = vrot.lane.b32.xlu1 %v1837_v7, %s2893_s25 }
 0x783   :  { %v1906_v8 = vpop.f32.mrb[28].mxu1 }
 0x784   :  { %v2766_v10 = vpop.f32.mrb[29].mxu1 }
 0x797   :  { %v1912_v11 = vpop.permute.xlu1 %1911 }
 0x798   :  { %2770 = vmatmul.mubr.msk.f32.vlgmr.msra.gmra.mrb[30].mxu1 %vm1078_vm5, %v1912_v11 }
 0x799   :  { %2773 = vmatpush3.msra.mxu1 %v2394_v47  ;;  %2774 = vmatprep.mubr.msk.f32.mxu1 %vm2890_vm2, %v2891_v62 }
 0x79a   :  { %2777 = vmatprep.subr.mxu1 %v2891_v62 }
 0x86b   :  { %v1981_v12 = vpop.f32.mrb[30].mxu1 }
 0x86c   :  { %v1982_v13 = vadd.f32 %v1981_v12, %v1906_v8  ;;  %v2771_v15 = vpop.f32.mrb[31].mxu1 }
 0x86e   :  { %v1986_v18 = vadd.f32 %v1985_v17, %v1982_v13 }
 0x870   :  { %1988 = vrot.lane.b32.xlu0 %v1986_v18, %s2892_s3  ;;  %2775 = vmatmul.mubr.msk.f32.vlgmr.msra.gmra.mrb[32].mxu1 %vm1078_vm5, %v1986_v18  ;;  %v2139_v29 = vsel %vm1225_vm6, %v1986_v18, 0.0 }
 0x871   :  { %2778 = vmatpush3.msra.mxu1 %v2393_v56  ;;  %2779 = vmatprep.mubr.msk.f32.mxu1 %vm2890_vm2, %v2891_v62 }
 0x872   :  { %2787 = vmatprep.subr.mxu1 %v2891_v62 }
 0x8e2   :  { %v1989_v19 = vpop.permute.xlu0 %1988 }
 0x8e3   :  { %v1991_v21 = vmul.f32 %v3288_v28, %v1989_v19 }
 0x8e5   :  { %2065 = vrot.lane.b32.xlu1 %v1991_v21, %s2893_s25 }
 0x943   :  { %v2060_v22 = vpop.f32.mrb[32].mxu1 }
 0x944   :  { %v2776_v23 = vpop.f32.mrb[33].mxu1 }
 0x957   :  { %v2066_v24 = vpop.permute.xlu1 %2065 }
 0x958   :  { %2780 = vmatmul.mubr.msk.f32.vlgmr.msra.gmra.mrb[34].mxu1 %vm1078_vm5, %v2066_v24 }
 0x959   :  { %2788 = vmatpush3.msra.mxu1 %v2393_v56  ;;  %2789 = vmatprep.mubr.msk.f32.mxu1 %vm2890_vm2, %v2891_v62 }
 0xa2b   :  { %v2135_v25 = vpop.f32.mrb[34].mxu1 }
 0xa2c   :  { %v2136_v26 = vadd.f32 %v2135_v25, %v2060_v22  ;;  %v2781_v27 = vpop.f32.mrb[35].mxu1 }
 0xa2e   :  { %v2140_v31 = vadd.f32 %v2139_v29, %v2136_v26 }
 0xa30   :  { %2142 = vrot.lane.b32.xlu0 %v2140_v31, %s2892_s3  ;;  %2785 = vmatmul.mubr.msk.f32.vlgmr.msra.gmra.mrb[64].mxu0 %vm1078_vm5, %v2140_v31  ;;  %v2293_v40 = vsel %vm1225_vm6, %v2140_v31, 0.0 }
 0xa34   :  { %2300 = vrot.lane.b32.xlu0 %v1678_v32, %s2893_s25 }
 0xaa2   :  { %v2143_v33 = vpop.permute.xlu0 %2142 }
 0xaa3   :  { %v2145_v62 = vmul.f32 %v3288_v28, %v2143_v33 }
 0xaa5   :  { %2219 = vrot.lane.b32.xlu1 %v2145_v62, %s2893_s25 }
 0xaa6   :  { %v2301_v28 = vpop.permute.xlu0 %2300 }
 0xaa9   :  { %2304 = vrot.lane.b32.xlu1 %v3283_v16, %s2894_s6 }
 0xb03   :  { %v2214_v34 = vpop.f32.mrb[64].mxu0 }
 0xb04   :  { %v2786_v35 = vpop.f32.mrb[65].mxu0 }
 0xb17   :  { %v2220_v36 = vpop.permute.xlu1 %2219 }
 0xb18   :  { %2790 = vmatmul.mubr.msk.f32.vlgmr.msra.gmra.mrb[36].mxu1 %vm1078_vm5, %v2220_v36 }
 0xb1b   :  { %v2305_v16 = vpop.permute.xlu1 %2304 }
 0xbeb   :  { %v2289_v37 = vpop.f32.mrb[36].mxu1 }
 0xbec   :  { %v2290_v38 = vadd.f32 %v2289_v37, %v2214_v34  ;;  %v2791_v39 = vpop.f32.mrb[37].mxu1 }
 0xbee   :  { %v2294_v41 = vadd.f32 %v2293_v40, %v2290_v38 }
 0xbf0   :  { %vm2295_vm9 = vcmp.gt.f32.partialorder %v2294_v41, 0.0 }
 0xbf1   :  { %v2296_v42 = vsel %vm2295_vm9, %v2294_v41, 1e-05 }
 0xbf2   :  { %vm2297_vm10 = vcmp.lt.f32.partialorder %v2296_v42, 1.0 }
 0xbf3   :  { %v2298_v43 = vsel %vm2297_vm10, %v2296_v42, 0.99999 }
 0xbf4   :  { %v2307_v44 = vsel %vm1078_vm5, %v2301_v28, %v2298_v43 }
 0xbf5   :  { %v2309_v45 = vsel %vm2308_vm11, %v2307_v44, %v2305_v16 }
 0xbf6   :  { %v2311_v46 = vsel %vm2310_vm12, %v2309_v45, 0.0 }
 0xbf7   :  { %2312 = vst [vmem:[%s3403_s8] sm:$0x3] %v2311_v46 }

</bundles_post_ra>
